<compile_context>
chip_gen: v7x
topology: tpu7x:2x2x1
jax: 0.10.0
libtpu: 0.0.40
codegen_flags: <defaults>
</compile_context>

<pallas_src>
import functools

import jax
import jax.numpy as jnp
from jax import lax
from jax.experimental import pallas as pl
from jax.experimental.pallas import tpu as pltpu

_BN_EPS = 1e-5
_LANE = 128
_SUBLANE = 8
_NUM_PARTIALS = 2      # per-core partial BN stats -> phase 1 can use both TCs on v7x


def _round_up(x, m):
    return (x + m - 1) // m * m


def _vmem_budgets():
    """Generation-aware (per-step tile budget, vmem_limit_bytes)."""
    try:
        cap = int(pltpu.get_tpu_info().vmem_capacity_bytes)
    except Exception:                      # conservative fallback (v7x-sized)
        cap = 64 * 1024 * 1024
    limit = min((cap * 3) // 4, 96 * 1024 * 1024)     # 96 MiB on v5e/v6e, 48 MiB on v7x
    budget = min((cap * 11) // 20, 72 * 1024 * 1024)
    return budget, limit


def _phase1_vmem_bytes(tm, cin, K, Cpad, two_blocks):
    """Rough per-step VMEM need of phase 1 (double-buffered blocks + temporaries)."""
    x_blocks = (4 if two_blocks else 2) * tm * cin * 2      # bf16 input blocks, 2 bufs each
    temps = (3 if two_blocks else 1) * tm * cin * 2         # concat window + tap slices
    weight = 2 * K * Cpad * 2                               # resident bf16 weight
    y_out = 2 * tm * Cpad * 2                               # bf16 y tile, 2 bufs
    acc = 2 * tm * Cpad * 4                                 # f32 accumulator + y*y temp
    return x_blocks + temps + weight + y_out + acc + 8 * tm


def _pick_block_m(cin, K, Cpad, min_tm, m_total, budget, two_blocks):
    cap = max(min_tm, min(1024, _round_up(max(m_total, 1), _LANE)))
    tm = cap
    while tm - _LANE >= min_tm and _phase1_vmem_bytes(tm, cin, K, Cpad, two_blocks) > budget:
        tm -= _LANE
    return max(tm, min_tm)


# --------------------------------------------------------------------------- #
# Phase 1: fused tap matmuls (bf16 MXU, f32 acc) + masked per-channel stats.
# --------------------------------------------------------------------------- #
def _conv_stats_kernel(*refs, cin, tap_offsets, two_blocks):
    if two_blocks:
        xa_ref, xb_ref, mask_ref, w_ref, y_ref, sum_ref, ssq_ref = refs
    else:
        xa_ref, mask_ref, w_ref, y_ref, sum_ref, ssq_ref = refs

    @pl.when(pl.program_id(1) == 0)
    def _init():
        sum_ref[...] = jnp.zeros_like(sum_ref)
        ssq_ref[...] = jnp.zeros_like(ssq_ref)

    tm = y_ref.shape[0]
    if two_blocks:
        # 2*tm consecutive input rows cover every shifted tap window of this tile,
        # so each input row is read from HBM ~2x total instead of kh*kw times.
        x_win = jnp.concatenate([xa_ref[...], xb_ref[...]], axis=0)
    else:
        x_win = xa_ref[...]

    acc = None
    for t, off in enumerate(tap_offsets):
        x_t = x_win[off:off + tm, :]                    # static (possibly unaligned) slice
        w_t = w_ref[t * cin:(t + 1) * cin, :]
        d = jnp.dot(x_t, w_t, preferred_element_type=jnp.float32)
        acc = d if acc is None else acc + d

    y_ref[...] = acc.astype(y_ref.dtype)                # bf16 intermediate (halved round trip)

    # Masked per-channel sum / sum-of-squares via MXU dots; the mask row zeroes
    # padded / wrap-around rows so they never pollute the batch statistics.
    m8 = jnp.broadcast_to(mask_ref[...], (sum_ref.shape[0], tm))
    sum_ref[...] += jnp.dot(m8, acc, preferred_element_type=jnp.float32)
    ssq_ref[...] += jnp.dot(m8, acc * acc, preferred_element_type=jnp.float32)


# --------------------------------------------------------------------------- #
# Phase 2: folded BN affine + ReLU, fully parallel over M tiles.
# --------------------------------------------------------------------------- #
def _bn_relu_kernel(y_ref, scale_ref, shift_ref, o_ref):
    y = y_ref[...].astype(jnp.float32)
    o_ref[...] = jnp.maximum(y * scale_ref[...] + shift_ref[...], 0.0)


def conv_bn_relu(x, weight, gamma, beta, *, stride=1, padding=0, dilation=1,
                 block_m=None, matmul_dtype=jnp.bfloat16):
    """x: (N, Cin, H, W); weight: (Cout, Cin, kh, kw); gamma/beta: (Cout,). Returns NCHW f32."""
    N, Cin, H, W = x.shape
    Cout, _, kh, kw = weight.shape
    Ho = (H + 2 * padding - dilation * (kh - 1) - 1) // stride + 1
    Wo = (W + 2 * padding - dilation * (kw - 1) - 1) // stride + 1
    M = N * Ho * Wo
    K = kh * kw * Cin
    Cpad = _round_up(Cout, _LANE)
    Hp, Wp = H + 2 * padding, W + 2 * padding
    max_off = (kh - 1) * dilation * Wp + (kw - 1) * dilation

    budget, vmem_limit = _vmem_budgets()

    # ---- glue: NHWC + spatial zero-pad (input-sized, not K-expanded) ----
    x_nhwc = jnp.transpose(x, (0, 2, 3, 1))
    x_pad = jnp.pad(x_nhwc, ((0, 0), (padding, padding), (padding, padding), (0, 0)))

    fused = (stride == 1) and (max_off <= 1024)
    if fused:
        # Fused im2col: every padded position is a "base row"; rows whose (r, c)
        # fall outside (Ho, Wo) produce garbage that is masked out of the stats
        # and sliced away at the end.
        rows = x_pad.reshape(N * Hp * Wp, Cin).astype(matmul_dtype)
        cin_tap = Cin
        tap_offsets = [ti * dilation * Wp + tj * dilation
                       for ti in range(kh) for tj in range(kw)]
        m_compute = N * Hp * Wp
        two_blocks = max_off > 0
    else:
        # TODO(synk): strided convs still go through a materialized im2col matmul;
        # fusing them needs a manual-DMA walk over non-contiguous rows.
        slices = []
        for i in range(kh):
            for j in range(kw):
                r0, c0 = i * dilation, j * dilation
                slices.append(
                    x_pad[:,
                          r0: r0 + stride * (Ho - 1) + 1: stride,
                          c0: c0 + stride * (Wo - 1) + 1: stride,
                          :])
        rows = jnp.stack(slices, axis=3).reshape(M, K).astype(matmul_dtype)
        cin_tap = K
        tap_offsets = [0]
        m_compute = M
        two_blocks = False

    min_tm = max(_LANE, _round_up(max_off, _LANE)) if two_blocks else _LANE
    if block_m is not None:
        tm = max(min_tm, _round_up(block_m, _LANE))
    else:
        tm = _pick_block_m(cin_tap, K, Cpad, min_tm, m_compute, budget, two_blocks)

    mp = _round_up(m_compute, _NUM_PARTIALS * tm)
    grid_m = mp // tm
    gmh = grid_m // _NUM_PARTIALS

    extra = tm if two_blocks else 0                      # room for the "next block" window
    rows = jnp.pad(rows, ((0, mp + extra - m_compute), (0, 0)))

    # Row-validity mask: 1.0 where the base row is a real conv output position.
    p_idx = jnp.arange(mp, dtype=jnp.int32)
    if fused:
        q = p_idx % (Hp * Wp)
        valid = (p_idx < m_compute) & ((q // Wp) < Ho) & ((q % Wp) < Wo)
    else:
        valid = p_idx < m_compute
    mask = valid.astype(jnp.float32).reshape(1, mp)

    w_mat = jnp.transpose(weight, (2, 3, 1, 0)).reshape(K, Cout)
    w_mat = jnp.pad(w_mat, ((0, 0), (0, Cpad - Cout))).astype(matmul_dtype)

    # ---- phase 1: conv matmul + masked BN batch statistics (per-core partials) ----
    kernel1 = functools.partial(_conv_stats_kernel, cin=cin_tap,
                                tap_offsets=tap_offsets, two_blocks=two_blocks)
    x_specs = [pl.BlockSpec((tm, cin_tap), lambda p, i: (p * gmh + i, 0))]
    x_args = [rows]
    if two_blocks:
        x_specs.append(pl.BlockSpec((tm, cin_tap), lambda p, i: (p * gmh + i + 1, 0)))
        x_args.append(rows)                              # same HBM buffer, next block

    y, ch_sum, ch_ssq = pl.pallas_call(
        kernel1,
        out_shape=(
            jax.ShapeDtypeStruct((mp, Cpad), jnp.bfloat16),
            jax.ShapeDtypeStruct((_NUM_PARTIALS * _SUBLANE, Cpad), jnp.float32),
            jax.ShapeDtypeStruct((_NUM_PARTIALS * _SUBLANE, Cpad), jnp.float32),
        ),
        grid=(_NUM_PARTIALS, gmh),
        in_specs=x_specs + [
            pl.BlockSpec((1, tm), lambda p, i: (0, p * gmh + i)),
            pl.BlockSpec((K, Cpad), lambda p, i: (0, 0)),     # weight stays resident
        ],
        out_specs=(
            pl.BlockSpec((tm, Cpad), lambda p, i: (p * gmh + i, 0)),
            pl.BlockSpec((_SUBLANE, Cpad), lambda p, i: (p, 0)),   # per-core partial sums
            pl.BlockSpec((_SUBLANE, Cpad), lambda p, i: (p, 0)),
        ),
        compiler_params=pltpu.CompilerParams(
            dimension_semantics=("parallel", "arbitrary"),
            vmem_limit_bytes=vmem_limit,
        ),
        cost_estimate=pl.CostEstimate(
            flops=2 * mp * K * Cpad,
            transcendentals=0,
            bytes_accessed=2 * mp * cin_tap * (2 if two_blocks else 1)
            + 2 * K * Cpad + 2 * mp * Cpad + 4 * mp,
        ),
    )(*x_args, mask, w_mat)

    # ---- combine partials + fold BN into (scale, shift) — tiny (Cpad,) XLA math ----
    total_sum = ch_sum.reshape(_NUM_PARTIALS, _SUBLANE, Cpad)[:, 0, :].sum(axis=0)
    total_ssq = ch_ssq.reshape(_NUM_PARTIALS, _SUBLANE, Cpad)[:, 0, :].sum(axis=0)
    count = float(M)
    mean = total_sum / count
    var = jnp.maximum(total_ssq / count - mean * mean, 0.0)   # biased var (training BN)
    inv = lax.rsqrt(var + _BN_EPS)
    g = jnp.pad(gamma.astype(jnp.float32), (0, Cpad - Cout))
    b = jnp.pad(beta.astype(jnp.float32), (0, Cpad - Cout))
    scale = (g * inv).reshape(1, Cpad)
    shift = (b - mean * g * inv).reshape(1, Cpad)

    # ---- phase 2: normalize + ReLU (parallel / megacore-shardable) ----
    # NOTE: y is bf16 and the module output is f32, so input_output_aliases cannot
    # reuse y's HBM buffer here.
    out2d = pl.pallas_call(
        _bn_relu_kernel,
        out_shape=jax.ShapeDtypeStruct((mp, Cpad), jnp.float32),
        grid=(grid_m,),
        in_specs=[
            pl.BlockSpec((tm, Cpad), lambda i: (i, 0)),
            pl.BlockSpec((1, Cpad), lambda i: (0, 0)),
            pl.BlockSpec((1, Cpad), lambda i: (0, 0)),
        ],
        out_specs=pl.BlockSpec((tm, Cpad), lambda i: (i, 0)),
        compiler_params=pltpu.CompilerParams(
            dimension_semantics=("parallel",),
            vmem_limit_bytes=vmem_limit,
        ),
        cost_estimate=pl.CostEstimate(
            flops=2 * mp * Cpad,
            transcendentals=0,
            bytes_accessed=6 * mp * Cpad + 8 * Cpad,
        ),
    )(y, scale, shift)

    # ---- slice valid rows / channels, back to NCHW (one fused XLA copy) ----
    if fused:
        out = out2d[:m_compute].reshape(N, Hp, Wp, Cpad)[:, :Ho, :Wo, :Cout]
    else:
        out = out2d[:M].reshape(N, Ho, Wo, Cpad)[:, :, :, :Cout]
    return jnp.transpose(out, (0, 3, 1, 2))


def _reference(x, weight, gamma, beta, *, stride, padding, dilation):
    y = lax.conv_general_dilated(
        x, weight,
        window_strides=(stride, stride),
        padding=[(padding, padding), (padding, padding)],
        rhs_dilation=(dilation, dilation),
        dimension_numbers=("NCHW", "OIHW", "NCHW"),
    )
    mean = y.mean(axis=(0, 2, 3), keepdims=True)
    var = jnp.square(y - mean).mean(axis=(0, 2, 3), keepdims=True)
    yhat = (y - mean) * lax.rsqrt(var + _BN_EPS)
    yhat = yhat * gamma.reshape(1, -1, 1, 1) + beta.reshape(1, -1, 1, 1)
    return jnp.maximum(yhat, 0.0)


if __name__ == "__main__":
    key = jax.random.PRNGKey(0)
    k_x, k_w = jax.random.split(key)

    # Small shapes: N=2, Cin=4, H=W=16, Cout=8, kernel=3, stride=1, padding=1
    N, Cin, H, W = 2, 4, 16, 16
    Cout, ksize, stride, padding, dilation = 8, 3, 1, 1, 1

    x = jax.random.normal(k_x, (N, Cin, H, W), dtype=jnp.float32)
    # Deterministic synthetic Conv2d weight (bias=False); BN gamma=1, beta=0
    # (PyTorch default init for BatchNorm2d affine params).
    fan_in = Cin * ksize * ksize
    weight = jax.random.normal(k_w, (Cout, Cin, ksize, ksize), dtype=jnp.float32) / jnp.sqrt(fan_in)
    gamma = jnp.ones((Cout,), dtype=jnp.float32)
    beta = jnp.zeros((Cout,), dtype=jnp.float32)

    # block_m=128 -> 648 padded base rows over a (2, 3) grid: exercises the fused
    # tap windows, the per-core partial stats and the multi-tile pipeline.
    out = conv_bn_relu(x, weight, gamma, beta,
                       stride=stride, padding=padding, dilation=dilation,
                       block_m=128)
    out = jax.block_until_ready(out)

    ref = _reference(x, weight, gamma, beta,
                     stride=stride, padding=padding, dilation=dilation)
    assert out.shape == (N, Cout, H, W), out.shape
    err = jnp.abs(out - ref)
    # bf16 MXU path + bf16 y intermediate -> tolerance loosened vs the f32 reference.
    assert float(err.max()) < 1e-1, float(err.max())
    assert float(err.mean()) < 1e-2, float(err.mean())

    print("KERNEL_OK")
</pallas_src>

<mosaic_0001>
module attributes {stable_mosaic.version = 11 : i64} {
  func.func @_conv_stats_kernel(%arg0: i32, %arg1: i32, %arg2: memref<128x4xbf16, #tpu.memory_space<vmem>>, %arg3: memref<128x4xbf16, #tpu.memory_space<vmem>>, %arg4: memref<1x128xf32, #tpu.memory_space<vmem>>, %arg5: memref<36x128xbf16, #tpu.memory_space<vmem>>, %arg6: memref<128x128xbf16, #tpu.memory_space<vmem>>, %arg7: memref<8x128xf32, #tpu.memory_space<vmem>>, %arg8: memref<8x128xf32, #tpu.memory_space<vmem>>) attributes {dimension_semantics = [#tpu.dimension_semantics<parallel>, #tpu.dimension_semantics<arbitrary>], iteration_bounds = array<i64: 2, 3>, scalar_prefetch = 0 : i64, scratch_operands = 0 : i64, tpu.core_type = #tpu.core_type<tc>, window_params = [{transform_indices = @transform_0, window_bounds = array<i64: 128, 4>}, {transform_indices = @transform_1, window_bounds = array<i64: 128, 4>}, {transform_indices = @transform_2, window_bounds = array<i64: 1, 128>}, {pipeline_mode = #tpu.pipeline_mode<synchronous>, transform_indices = @transform_3, window_bounds = array<i64: 36, 128>}, {transform_indices = @transform_4, window_bounds = array<i64: 128, 128>}, {transform_indices = @transform_5, window_bounds = array<i64: 8, 128>}, {transform_indices = @transform_6, window_bounds = array<i64: 8, 128>}]} {
    %c0_i32 = arith.constant 0 : i32
    %0 = arith.cmpi eq, %arg1, %c0_i32 : i32
    %1 = arith.extui %0 : i1 to i32
    %c0_i32_0 = arith.constant 0 : i32
    %2 = arith.cmpi ne, %1, %c0_i32_0 : i32
    scf.if %2 {
      %cst_36 = arith.constant 0.000000e+00 : f32
      %55 = vector.broadcast %cst_36 : f32 to vector<8x128xf32>
      %c0_37 = arith.constant 0 : index
      %c0_38 = arith.constant 0 : index
      %56 = vector.load %arg7[%c0_37, %c0_38] : memref<8x128xf32, #tpu.memory_space<vmem>>, vector<8x128xf32>
      tpu.vector_store %arg7[%c0_37, %c0_38], %55 {strides = array<i32>} : memref<8x128xf32, #tpu.memory_space<vmem>>, vector<8x128xf32>,
      %cst_39 = arith.constant 0.000000e+00 : f32
      %57 = vector.broadcast %cst_39 : f32 to vector<8x128xf32>
      %c0_40 = arith.constant 0 : index
      %c0_41 = arith.constant 0 : index
      %58 = vector.load %arg8[%c0_40, %c0_41] : memref<8x128xf32, #tpu.memory_space<vmem>>, vector<8x128xf32>
      tpu.vector_store %arg8[%c0_40, %c0_41], %57 {strides = array<i32>} : memref<8x128xf32, #tpu.memory_space<vmem>>, vector<8x128xf32>,
    } else {
    }
    %c0 = arith.constant 0 : index
    %c0_1 = arith.constant 0 : index
    %3 = vector.load %arg2[%c0, %c0_1] : memref<128x4xbf16, #tpu.memory_space<vmem>>, vector<128x4xbf16>
    %c0_2 = arith.constant 0 : index
    %c0_3 = arith.constant 0 : index
    %4 = vector.load %arg3[%c0_2, %c0_3] : memref<128x4xbf16, #tpu.memory_space<vmem>>, vector<128x4xbf16>
    %5 = tpu.concatenate %3, %4 in 0 : vector<128x4xbf16>, vector<128x4xbf16> -> vector<256x4xbf16>
    %6 = vector.extract_strided_slice %5 {offsets = [0, 0], sizes = [128, 4], strides = [1, 1]} : vector<256x4xbf16> to vector<128x4xbf16>
    %c0_4 = arith.constant 0 : index
    %c0_5 = arith.constant 0 : index
    %7 = vector.load %arg5[%c0_4, %c0_5] : memref<36x128xbf16, #tpu.memory_space<vmem>>, vector<4x128xbf16>
    %cst = arith.constant dense<0.000000e+00> : vector<128x128xf32>
    %8 = tpu.matmul %6, %7, %cst {dimension_numbers = #tpu.dot_dimension_numbers<[1], [0], [0], [1], [0, 0, 1, 1], [], []>} : vector<128x4xbf16>, vector<4x128xbf16>, vector<128x128xf32> -> vector<128x128xf32>
    %9 = vector.extract_strided_slice %5 {offsets = [1, 0], sizes = [128, 4], strides = [1, 1]} : vector<256x4xbf16> to vector<128x4xbf16>
    %c4 = arith.constant 4 : index
    %c0_6 = arith.constant 0 : index
    %10 = vector.load %arg5[%c4, %c0_6] : memref<36x128xbf16, #tpu.memory_space<vmem>>, vector<4x128xbf16>
    %cst_7 = arith.constant dense<0.000000e+00> : vector<128x128xf32>
    %11 = tpu.matmul %9, %10, %cst_7 {dimension_numbers = #tpu.dot_dimension_numbers<[1], [0], [0], [1], [0, 0, 1, 1], [], []>} : vector<128x4xbf16>, vector<4x128xbf16>, vector<128x128xf32> -> vector<128x128xf32>
    %12 = arith.addf %8, %11 : vector<128x128xf32>
    %13 = vector.extract_strided_slice %5 {offsets = [2, 0], sizes = [128, 4], strides = [1, 1]} : vector<256x4xbf16> to vector<128x4xbf16>
    %c8 = arith.constant 8 : index
    %c0_8 = arith.constant 0 : index
    %14 = vector.load %arg5[%c8, %c0_8] : memref<36x128xbf16, #tpu.memory_space<vmem>>, vector<4x128xbf16>
    %cst_9 = arith.constant dense<0.000000e+00> : vector<128x128xf32>
    %15 = tpu.matmul %13, %14, %cst_9 {dimension_numbers = #tpu.dot_dimension_numbers<[1], [0], [0], [1], [0, 0, 1, 1], [], []>} : vector<128x4xbf16>, vector<4x128xbf16>, vector<128x128xf32> -> vector<128x128xf32>
    %16 = arith.addf %12, %15 : vector<128x128xf32>
    %17 = vector.extract_strided_slice %5 {offsets = [18, 0], sizes = [128, 4], strides = [1, 1]} : vector<256x4xbf16> to vector<128x4xbf16>
    %c12 = arith.constant 12 : index
    %c0_10 = arith.constant 0 : index
    %18 = vector.load %arg5[%c12, %c0_10] : memref<36x128xbf16, #tpu.memory_space<vmem>>, vector<4x128xbf16>
    %cst_11 = arith.constant dense<0.000000e+00> : vector<128x128xf32>
    %19 = tpu.matmul %17, %18, %cst_11 {dimension_numbers = #tpu.dot_dimension_numbers<[1], [0], [0], [1], [0, 0, 1, 1], [], []>} : vector<128x4xbf16>, vector<4x128xbf16>, vector<128x128xf32> -> vector<128x128xf32>
    %20 = arith.addf %16, %19 : vector<128x128xf32>
    %21 = vector.extract_strided_slice %5 {offsets = [19, 0], sizes = [128, 4], strides = [1, 1]} : vector<256x4xbf16> to vector<128x4xbf16>
    %c16 = arith.constant 16 : index
    %c0_12 = arith.constant 0 : index
    %22 = vector.load %arg5[%c16, %c0_12] : memref<36x128xbf16, #tpu.memory_space<vmem>>, vector<4x128xbf16>
    %cst_13 = arith.constant dense<0.000000e+00> : vector<128x128xf32>
    %23 = tpu.matmul %21, %22, %cst_13 {dimension_numbers = #tpu.dot_dimension_numbers<[1], [0], [0], [1], [0, 0, 1, 1], [], []>} : vector<128x4xbf16>, vector<4x128xbf16>, vector<128x128xf32> -> vector<128x128xf32>
    %24 = arith.addf %20, %23 : vector<128x128xf32>
    %25 = vector.extract_strided_slice %5 {offsets = [20, 0], sizes = [128, 4], strides = [1, 1]} : vector<256x4xbf16> to vector<128x4xbf16>
    %c20 = arith.constant 20 : index
    %c0_14 = arith.constant 0 : index
    %26 = vector.load %arg5[%c20, %c0_14] : memref<36x128xbf16, #tpu.memory_space<vmem>>, vector<4x128xbf16>
    %cst_15 = arith.constant dense<0.000000e+00> : vector<128x128xf32>
    %27 = tpu.matmul %25, %26, %cst_15 {dimension_numbers = #tpu.dot_dimension_numbers<[1], [0], [0], [1], [0, 0, 1, 1], [], []>} : vector<128x4xbf16>, vector<4x128xbf16>, vector<128x128xf32> -> vector<128x128xf32>
    %28 = arith.addf %24, %27 : vector<128x128xf32>
    %29 = vector.extract_strided_slice %5 {offsets = [36, 0], sizes = [128, 4], strides = [1, 1]} : vector<256x4xbf16> to vector<128x4xbf16>
    %c24 = arith.constant 24 : index
    %c0_16 = arith.constant 0 : index
    %30 = vector.load %arg5[%c24, %c0_16] : memref<36x128xbf16, #tpu.memory_space<vmem>>, vector<4x128xbf16>
    %cst_17 = arith.constant dense<0.000000e+00> : vector<128x128xf32>
    %31 = tpu.matmul %29, %30, %cst_17 {dimension_numbers = #tpu.dot_dimension_numbers<[1], [0], [0], [1], [0, 0, 1, 1], [], []>} : vector<128x4xbf16>, vector<4x128xbf16>, vector<128x128xf32> -> vector<128x128xf32>
    %32 = arith.addf %28, %31 : vector<128x128xf32>
    %33 = vector.extract_strided_slice %5 {offsets = [37, 0], sizes = [128, 4], strides = [1, 1]} : vector<256x4xbf16> to vector<128x4xbf16>
    %c28 = arith.constant 28 : index
    %c0_18 = arith.constant 0 : index
    %34 = vector.load %arg5[%c28, %c0_18] : memref<36x128xbf16, #tpu.memory_space<vmem>>, vector<4x128xbf16>
    %cst_19 = arith.constant dense<0.000000e+00> : vector<128x128xf32>
    %35 = tpu.matmul %33, %34, %cst_19 {dimension_numbers = #tpu.dot_dimension_numbers<[1], [0], [0], [1], [0, 0, 1, 1], [], []>} : vector<128x4xbf16>, vector<4x128xbf16>, vector<128x128xf32> -> vector<128x128xf32>
    %36 = arith.addf %32, %35 : vector<128x128xf32>
    %37 = vector.extract_strided_slice %5 {offsets = [38, 0], sizes = [128, 4], strides = [1, 1]} : vector<256x4xbf16> to vector<128x4xbf16>
    %c32 = arith.constant 32 : index
    %c0_20 = arith.constant 0 : index
    %38 = vector.load %arg5[%c32, %c0_20] : memref<36x128xbf16, #tpu.memory_space<vmem>>, vector<4x128xbf16>
    %cst_21 = arith.constant dense<0.000000e+00> : vector<128x128xf32>
    %39 = tpu.matmul %37, %38, %cst_21 {dimension_numbers = #tpu.dot_dimension_numbers<[1], [0], [0], [1], [0, 0, 1, 1], [], []>} : vector<128x4xbf16>, vector<4x128xbf16>, vector<128x128xf32> -> vector<128x128xf32>
    %40 = arith.addf %36, %39 : vector<128x128xf32>
    %41 = arith.truncf %40 : vector<128x128xf32> to vector<128x128xbf16>
    %c0_22 = arith.constant 0 : index
    %c0_23 = arith.constant 0 : index
    %42 = vector.load %arg6[%c0_22, %c0_23] : memref<128x128xbf16, #tpu.memory_space<vmem>>, vector<128x128xbf16>
    tpu.vector_store %arg6[%c0_22, %c0_23], %41 {strides = array<i32>} : memref<128x128xbf16, #tpu.memory_space<vmem>>, vector<128x128xbf16>,
    %c0_24 = arith.constant 0 : index
    %c0_25 = arith.constant 0 : index
    %43 = vector.load %arg4[%c0_24, %c0_25] : memref<1x128xf32, #tpu.memory_space<vmem>>, vector<1x128xf32>
    %44 = vector.shape_cast %43 : vector<1x128xf32> to vector<1x128xf32>
    %45 = vector.broadcast %44 : vector<1x128xf32> to vector<8x128xf32>
    %c0_26 = arith.constant 0 : index
    %c0_27 = arith.constant 0 : index
    %46 = vector.load %arg7[%c0_26, %c0_27] : memref<8x128xf32, #tpu.memory_space<vmem>>, vector<8x128xf32>
    %cst_28 = arith.constant dense<0.000000e+00> : vector<8x128xf32>
    %47 = tpu.matmul %45, %40, %cst_28 {dimension_numbers = #tpu.dot_dimension_numbers<[1], [0], [0], [1], [0, 0, 1, 1], [], []>} : vector<8x128xf32>, vector<128x128xf32>, vector<8x128xf32> -> vector<8x128xf32>
    %48 = arith.addf %46, %47 : vector<8x128xf32>
    %c0_29 = arith.constant 0 : index
    %c0_30 = arith.constant 0 : index
    %49 = vector.load %arg7[%c0_29, %c0_30] : memref<8x128xf32, #tpu.memory_space<vmem>>, vector<8x128xf32>
    tpu.vector_store %arg7[%c0_29, %c0_30], %48 {strides = array<i32>} : memref<8x128xf32, #tpu.memory_space<vmem>>, vector<8x128xf32>,
    %c0_31 = arith.constant 0 : index
    %c0_32 = arith.constant 0 : index
    %50 = vector.load %arg8[%c0_31, %c0_32] : memref<8x128xf32, #tpu.memory_space<vmem>>, vector<8x128xf32>
    %51 = arith.mulf %40, %40 : vector<128x128xf32>
    %cst_33 = arith.constant dense<0.000000e+00> : vector<8x128xf32>
    %52 = tpu.matmul %45, %51, %cst_33 {dimension_numbers = #tpu.dot_dimension_numbers<[1], [0], [0], [1], [0, 0, 1, 1], [], []>} : vector<8x128xf32>, vector<128x128xf32>, vector<8x128xf32> -> vector<8x128xf32>
    %53 = arith.addf %50, %52 : vector<8x128xf32>
    %c0_34 = arith.constant 0 : index
    %c0_35 = arith.constant 0 : index
    %54 = vector.load %arg8[%c0_34, %c0_35] : memref<8x128xf32, #tpu.memory_space<vmem>>, vector<8x128xf32>
    tpu.vector_store %arg8[%c0_34, %c0_35], %53 {strides = array<i32>} : memref<8x128xf32, #tpu.memory_space<vmem>>, vector<8x128xf32>,
    return
  }
  func.func @transform_0(%arg0: i32, %arg1: i32) -> (i32, i32) {
    %c3_i32 = arith.constant 3 : i32
    %0 = arith.muli %arg0, %c3_i32 : i32
    %1 = arith.addi %0, %arg1 : i32
    %c0_i32 = arith.constant 0 : i32
    %c0_i32_0 = arith.constant 0 : i32
    return %1, %c0_i32 : i32, i32
  }
  func.func @transform_1(%arg0: i32, %arg1: i32) -> (i32, i32) {
    %c3_i32 = arith.constant 3 : i32
    %0 = arith.muli %arg0, %c3_i32 : i32
    %1 = arith.addi %0, %arg1 : i32
    %c1_i32 = arith.constant 1 : i32
    %2 = arith.addi %1, %c1_i32 : i32
    %c0_i32 = arith.constant 0 : i32
    %c0_i32_0 = arith.constant 0 : i32
    return %2, %c0_i32 : i32, i32
  }
  func.func @transform_2(%arg0: i32, %arg1: i32) -> (i32, i32) {
    %c3_i32 = arith.constant 3 : i32
    %0 = arith.muli %arg0, %c3_i32 : i32
    %1 = arith.addi %0, %arg1 : i32
    %c0_i32 = arith.constant 0 : i32
    %c0_i32_0 = arith.constant 0 : i32
    return %c0_i32, %1 : i32, i32
  }
  func.func @transform_3(%arg0: i32, %arg1: i32) -> (i32, i32) {
    %c0_i32 = arith.constant 0 : i32
    %c0_i32_0 = arith.constant 0 : i32
    %c0_i32_1 = arith.constant 0 : i32
    return %c0_i32, %c0_i32_0 : i32, i32
  }
  func.func @transform_4(%arg0: i32, %arg1: i32) -> (i32, i32) {
    %c3_i32 = arith.constant 3 : i32
    %0 = arith.muli %arg0, %c3_i32 : i32
    %1 = arith.addi %0, %arg1 : i32
    %c0_i32 = arith.constant 0 : i32
    %c0_i32_0 = arith.constant 0 : i32
    return %1, %c0_i32 : i32, i32
  }
  func.func @transform_5(%arg0: i32, %arg1: i32) -> (i32, i32) {
    %c0_i32 = arith.constant 0 : i32
    %c0_i32_0 = arith.constant 0 : i32
    return %arg0, %c0_i32 : i32, i32
  }
  func.func @transform_6(%arg0: i32, %arg1: i32) -> (i32, i32) {
    %c0_i32 = arith.constant 0 : i32
    %c0_i32_0 = arith.constant 0 : i32
    return %arg0, %c0_i32 : i32, i32
  }
}

</mosaic_0001>

<bundles_post_ra>
// kernel: tpu_custom_call.1
= control target key start
LH: loop header
LB: loop body
LE: loop exit
PB: predicated region body
PF: predicated region fallthrough
CT: control target
= control target key end

     0   :  { %s4223_s0 = inlined_call_operand.vmem [shape: bf16[896,4], index: 0, kind: input, shape index: {}]   ;;  %s4224_s1 = inlined_call_operand.vmem [shape: bf16[896,4], index: 1, kind: input, shape index: {}]   ;;  %s4225_s2 = inlined_call_operand.vmem [shape: f32[1,768], index: 2, kind: input, shape index: {}]   ;;  %s4226_s3 = inlined_call_operand.vmem [shape: bf16[36,128], index: 3, kind: input, shape index: {}]   ;;  %s4227_s4 = inlined_call_operand.hbm [shape: bf16[768,128], index: 4, kind: output, shape index: {0}]   ;;  %s4228_s5 = inlined_call_operand.hbm [shape: f32[16,128], index: 5, kind: output, shape index: {1}]   ;;  %s4229_s6 = inlined_call_operand.hbm [shape: f32[16,128], index: 6, kind: output, shape index: {2}]  }
   0x1   :  { %4243 = sst [smem:[#allocation20_spill]] %s4229_s6 }
   0x2   :  { %12 = vsyncpa [#allocation3], 0 }
   0x3   :  { %14 = vsyncpa [#allocation3 + $0x1], 0 }
   0x4   :  { %15 = vsyncpa [#allocation5], 0 }
   0x5   :  { %17 = vsyncpa [#allocation5 + $0x1], 0  ;;  %s3406_s21 = smov 0   ;;  %s3408_s22 = smov 0  }
   0x6   :  { %s3410_s23 = smov 0   ;;  %s3412_s24 = smov 0  }
   0x7   :  { %s3414_s25 = smov 0   ;;  %s3416_s26 = smov 0  }
   0x8   :  { %s3418_s27 = smov 0   ;;  %s3420_s28 = smov 0  }
   0x9   :  { %s3422_s29 = smov 0   ;;  %s3424_s30 = smov 0  }
   0xa   :  { %s3426_s7 = smov 0  }
   0xb LB: > { %4244 = sst [smem:[#allocation9_spill]] %s3324_s22  ;;  %s4231_s8 = sadd.s32 4294967295, %s3360_s7   ;;  %s3360_s7 = sphi %s3426_s7, %s23_s7   ;;  %s3356_s30 = sphi %s3424_s30, %s4275_s30   ;;  %s3352_s29 = sphi %s3422_s29, %s4274_s29   ;;  %s3348_s28 = sphi %s3420_s28, %s4273_s28   ;;  %s3344_s27 = sphi %s3418_s27, %s4272_s27   ;;  %s3340_s26 = sphi %s3416_s26, %s4271_s26   ;;  %s3336_s25 = sphi %s3414_s25, %s4277_s25   ;;  %s3332_s24 = sphi %s3412_s24, %s4276_s24   ;;  %s3328_s23 = sphi %s3410_s23, %s4269_s23   ;;  %s3324_s22 = sphi %s3408_s22, %s4268_s22   ;;  %s3320_s21 = sphi %s3406_s21, %s4267_s21  }
   0xc   : > { %4245 = sst [smem:[#allocation10_spill]] %s3328_s23  ;;  %s4230_s9 = sadd.s32 4294967294, %s3360_s7  }
   0xd   : > { %4246 = sst [smem:[#allocation11_spill]] %s3332_s24  ;;  %s32_s10 = sadd.s32 1, %s3352_s29 }
   0xe   : > { %4247 = sst [smem:[#allocation12_spill]] %s3340_s26  ;;  %s35_s11 = sadd.s32 1, %s3356_s30 }
   0xf   : > { %4248 = sst [smem:[#allocation13_spill]] %s3352_s29  ;;  %p33_p0 = scmp.ge.s32.totalorder %s32_s10, 3 }
  0x10   : > { %4249 = sst [smem:[#allocation14_spill]] %s3356_s30  ;;  %s152_s12 = smul.u32 3, %s3356_s30 }
  0x11   : > { %s159_s13 = sadd.s32 1, %s3340_s26  ;;  %p169_p1 = scmp.ne.s32.totalorder %s3340_s26, %s3336_s25 }
  0x12   : > { %s4279_s10 = smov (%p33_p0, %s32_s10), 0  ;;  %s4281_s11 = smov (!%p33_p0, %s35_s11), %s3356_s30 }
  0x13   : > { %4250 = sst [smem:[#allocation15_spill]] %s4279_s10  ;;  %s153_s14 = sadd.s32 %s3352_s29, %s152_s12 }
  0x14   : > { %p3475_p2 = scmp.eq.s32.totalorder %s4231_s8, 5  ;;  %p37_p3 = scmp.ge.s32.totalorder %s4281_s11, 2 }
  0x15   : > { %p175_p4 = scmp.ne.s32.totalorder %s3336_s25, %s3332_s24  ;;  %p3489_p6 = scmp.eq.s32.totalorder %s4230_s9, 5 }
  0x16   : > { %p3483_p5 = por %p3475_p2, %p169_p1  ;;  %s4283_s11 = smov (%p37_p3, %s4281_s11), 0 }
  0x17   : > { %4254 = sst [smem:[#allocation16_spill]] %s4283_s11  ;;  %p3497_p7 = por %p3489_p6, %p175_p4 }
  0x18   : > { %s185_s19 = sadd.s32 1, %s3328_s23  ;;  %s154_s20 = smul.u32 3, %s4283_s11 }
  0x19   : > { %s4255_s18 = scalar_select %p3497_p7, 1, 0 }
  0x1a   : > { %s182_s12 = ssub.s32 %s3356_s30, %s4283_s11  ;;  %p195_p9 = scmp.ne.s32.totalorder %s3328_s23, %s3324_s22 }
  0x1b   : > { %4256 = sst [smem:[#allocation17_spill]] %s4255_s18  ;;  %p183_p8 = scmp.eq.s32.totalorder %s182_s12, 0 }
  0x1c   : > { %s155_s9 = sadd.s32 %s154_s20, %s4279_s10  ;;  %p201_p10 = scmp.ne.s32.totalorder %s3324_s22, %s3320_s21 }
  0x1d   : > { %s156_s8 = ssub.s32 %s153_s14, %s155_s9  ;;  %p3512_p11 = por %p195_p9, %p3475_p2 }
  0x1e   : > { %p157_p12 = scmp.eq.s32.totalorder %s156_s8, 0  ;;  %p3518_p13 = por %p201_p10, %p3489_p6 }
  0x1f   : > { %s3523_s18 = scalar_select %p183_p8, %s3328_s23, %s185_s19  }
  0x20   : > { %s3526_s6 = scalar_select %p157_p12, %s3340_s26, %s159_s13  }
  0x21   : > { %4259 = sst [smem:[#allocation18_spill]] %s3523_s18  ;;  %p2336_p0 = scmp.ge.s32.totalorder %s3360_s7, 1 }
  0x22   : > { %4260 = sst [smem:[#allocation19_spill]] %s3526_s6  ;;  %p287_p1 = scmp.lt.s32.totalorder %s3360_s7, 7 }
  0x24   : > { %p288_p3 = pnand %p2336_p0, %p287_p1 }
  0x25   : > { %s4238_s21 = sand.u32 (!%p288_p3), 1, %s3336_s25   ;;  %s332_s8 = sand.u32 (!%p288_p3), 1, %s3324_s22  }
  0x26   : > { %291 = sbr.rel (%p288_p3) target bundleno = 705 (0x2c1), region = 36  ;;  %s2337_s9 = sshll.u32 (!%p288_p3), %s4238_s21, 6 }
  0x27   : > { %s2338_s14 = sshll.u32 (!%p288_p3), %s332_s8, 3  ;;  %s342_s15 = smul.u32 (!%p288_p3), 3, %s3348_s28 }
  0x28   : > { %s3557_s22 = scalar_lea.vmem (!%p288_p3), [#allocation2], %s2337_s9  ;;  %s3561_s11 = scalar_lea.vmem (!%p288_p3), [#allocation6], %s2338_s14 }
  0x29   : > { %s3536_s17 = sadd.s32 (!%p288_p3), %s3344_s27, %s342_s15  ;;  %p2344_p8 = scmp.ne.s32.totalorder (!%p288_p3), %s3344_s27, 0 }
  0x2a   : > { %s2340_s13 = sshll.u32 (!%p288_p3), %s3536_s17, 4  ;;  %p366_p6 = scmp.lt.s32.totalorder (!%p288_p3), %s3536_s17, 5 }
  0x2b   : > { %p345_p2 = scmp.lt.s32.totalorder (!%p288_p3), %s2340_s13, 111  ;;  %s2459_s19 = sadd.s32 (!%p288_p3), 16, %s2340_s13 }
  0x2c   : > { %p356_p4 = scmp.lt.s32.totalorder (!%p288_p3), %s2459_s19, 111 }
  0x2d   : > { %s4285_s13 = smov (!%p345_p2, %s2340_s13), 111  ;;  %378 = sbr.rel (%p2344_p8) target bundleno = 52 (0x34), region = 40 }
  0x2e   : > { %s4287_s19 = smov (!%p356_p4, %s2459_s19), 111  ;;  %s2341_s20 = sshll.u32 %s4285_s13, 2  ;;  %v3362_v0 = vmov (!%p2344_p8), 0.0  }
  0x2f   : > { %s3543_s10 = scalar_lea.vmem %s4223_s0, %s2341_s20  ;;  %s2343_s8 = sshll.u32 %s4287_s19, 2  ;;  %380 = vst [vmem:[%s3561_s11] sm:$0xff] (!%p2344_p8), %v3362_v0 }
  0x30   : > { %s3548_s30 = scalar_lea.vmem %s4224_s1, %s2343_s8  ;;  %s3559_s13 = scalar_lea.vmem [#allocation4], %s2338_s14 }
  0x31   : > { %s3551_s6 = scalar_select %p366_p6, %s3536_s17, 5 }
  0x32   : > { %379 = vst [vmem:[%s3559_s13] sm:$0xff] (!%p2344_p8), %v3362_v0 }
  0x33   : > { %s368_s23 = scalar_lea.vmem %s4225_s2, %s3551_s6 }
  0x34 PF: > { %vm558_vm0 = vcmask 1041408   ;;  %v1060_v1 = vld [vmem:[%s4226_s3 + $0x8] sm:$0x3]  ;;  %v3570_v2 = vld [vmem:[%s3543_s10] sm:$0xff]   ;;  %vm460_vm1 = vsmask.f32 7424 }
  0x35   : > { %3051 = vmatprep.subr.msk.bf16.mxu0 %vm558_vm0, %v1060_v1  ;;  %v3167_v3 = vld [vmem:[%s4226_s3] ss:$0 sps:$4 sm:$0xcc]   ;;  %v1129_v4 = vsel %vm558_vm0, %v1060_v1, 0  ;;  %v3578_v6 = vld [vmem:[%s3543_s10 + $0x8] sm:$0xff]   ;;  %v462_v7 = vshrl.u32 %v3570_v2, 16 }
  0x36   : > { %2712 = vmatpush3.bf16.msra.mxu0 %v1129_v4  ;;  %v532_v5 = vrot.slane %v3167_v3, 2  ;;  %v464_v8 = vshll.u32 %v3570_v2, 16  ;;  %vm533_vm2 = vcmask 31744   ;;  %v3583_v9 = vld [vmem:[%s3543_s10 + $0x10] sm:$0xff]   ;;  %v469_v12 = vshll.u32 %v3578_v6, 16  ;;  %v3602_v24 = vld [vmem:[%s3543_s10 + $0x18] sm:$0xff]  }
  0x37   : > { %v473_v13 = vshrl.u32 %v3578_v6, 16  ;;  %v3590_v14 = vshll.u32 %v3583_v9, 16  ;;  %v3593_v15 = vshrl.u32 %v3583_v9, 16  ;;  %vm1061_vm3 = vsmask.f32 6400  ;;  %v3606_v29 = vld [vmem:[%s3543_s10 + $0x20] sm:$0xff]  }
  0x38   : > { %3047 = vmatprep.subr.msk.bf16.mxu1 %vm558_vm0, %v532_v5  ;;  %v560_v10 = vsel %vm558_vm0, %v532_v5, 0  ;;  %v466_v11 = vrot.slane %v464_v8, 1  ;;  %v471_v17 = vrot.slane %v469_v12, 1  ;;  %v1063_v19 = vrot.slane %v469_v12, 2  ;;  %v3626_v38 = vld [vmem:[%s3543_s10 + $0x28] sm:$0xff]   ;;  %v3634_v43 = vld [vmem:[%s3543_s10 + $0x30] sm:$0xff]  }
  0x39   : > { %2640 = vmatpush3.bf16.msra.mxu1 %v560_v10  ;;  %v1062_v18 = vrot.slane %v473_v13, 1  ;;  %v3171_v20 = vld [vmem:[%s4226_s3 + $0x8] ss:$0 sps:$4 sm:$0xcc]   ;;  %v1065_v21 = vrot.slane %v3593_v15, 1  ;;  %v1066_v22 = vrot.slane %v3590_v14, 2 }
  0x3a   : > { %v467_v16 = vor.u32 %v466_v11, %v462_v7  ;;  %v479_v23 = vrot.slane %v3590_v14, 1  ;;  %v475_v26 = vor.u32 %v473_v13, %v471_v17  ;;  %v1266_v28 = vrot.slane %v3171_v20, 2  ;;  %v3649_v52 = vld [vmem:[%s3543_s10 + $0x38] sm:$0xff]   ;;  %v3656_v57 = vld [vmem:[%s3548_s30] sm:$0xff]   ;;  %v3675_v1 = vld [vmem:[%s4226_s3 + $0xc] sm:$0x3] }
  0x3b   : > { %v1064_v27 = vor.u32 %v1063_v19, %v1062_v18  ;;  %v1067_v30 = vor.u32 %v1066_v22, %v1065_v21  ;;  %v3610_v31 = vshll.u32 %v3602_v24, 16  ;;  %v3613_v32 = vshrl.u32 %v3602_v24, 16  ;;  %v458_v0 = vld [vmem:[%s4226_s3] sm:$0x3]  ;;  %v3684_v8 = vld [vmem:[%s3548_s30 + $0x8] sm:$0xff]   ;;  %s2476_s6 = sshll.u32 %s3536_s17, 10 }
  0x3c   : > { %v472_v25 = vsel %vm460_vm1, %v467_v16, %v471_v17  ;;  %v483_v33 = vor.u32 %v3593_v15, %v479_v23  ;;  %3052 = vmatprep.subr.msk.bf16.mxu0 %vm558_vm0, %v1266_v28  ;;  %v480_v34 = vsel %vm460_vm1, %v475_v26, %v479_v23  ;;  %v1292_v35 = vsel %vm558_vm0, %v1266_v28, 0  ;;  %3048 = vmatprep.subr.msk.bf16.mxu1 %vm558_vm0, %v458_v0  ;;  %s4082_s12 = scalar_lea.hbm %s4227_s4, %s2476_s6  ;;  %s4261_s8 = sand.u32 1, %s3336_s25  }
  0x3d   : > { %2641 = vmatprep.mubr.msk.bf16.mxu1 %vm533_vm2, %v472_v25  ;;  %v3620_v36 = vshll.u32 %v3606_v29, 16  ;;  %v3623_v37 = vshrl.u32 %v3606_v29, 16  ;;  %v1068_v39 = vsel %vm1061_vm3, %v1064_v27, %v1067_v30  ;;  %v1069_v40 = vrot.slane %v3613_v32, 1  ;;  %s4088_s15 = scalar_lea.sflag [#allocation3], %s4261_s8  ;;  %s3366_s17 = smov [#allocation2]  }
  0x3e   : > { %2642 = vmatmul.mubr.msk.bf16.vlgmr.msra.gmra.mrb[0].mxu1 %vm533_vm2, %v480_v34  ;;  %v1070_v41 = vrot.slane %v3610_v31, 2  ;;  %v487_v42 = vrot.slane %v3610_v31, 1  ;;  %2713 = vmatprep.mubr.msk.bf16.mxu0 %vm533_vm2, %v1068_v39  ;;  %v3641_v47 = vshll.u32 %v3626_v38, 16  ;;  %v3646_v51 = vshrl.u32 %v3626_v38, 16 }
  0x3f   : > { %v1073_v44 = vrot.slane %v3623_v37, 1  ;;  %v1074_v45 = vrot.slane %v3620_v36, 2  ;;  %v495_v46 = vrot.slane %v3620_v36, 1  ;;  %v3661_v60 = vshll.u32 %v3634_v43, 16 }
  0x40   : > { %v1071_v48 = vor.u32 %v1070_v41, %v1069_v40  ;;  %v488_v49 = vsel %vm460_vm1, %v483_v33, %v487_v42  ;;  %v491_v50 = vor.u32 %v3613_v32, %v487_v42  ;;  %v1078_v54 = vrot.slane %v3641_v47, 2  ;;  %v775_v33 = vld [vmem:[%s4226_s3 + $0x4] sm:$0x3] }
  0x41   : > { %2645 = vmatprep.mubr.msk.bf16.mxu1 %vm533_vm2, %v488_v49  ;;  %v1075_v53 = vor.u32 %v1074_v45, %v1073_v44  ;;  %v499_v55 = vor.u32 %v3623_v37, %v495_v46  ;;  %v503_v56 = vrot.slane %v3641_v47, 1  ;;  %v1077_v59 = vrot.slane %v3646_v51, 1 }
  0x42   : > { %v1072_v58 = vsel %vm1061_vm3, %v1067_v30, %v1071_v48  ;;  %v496_v62 = vsel %vm460_vm1, %v491_v50, %v495_v46  ;;  %v3667_v63 = vshrl.u32 %v3634_v43, 16  ;;  %v1082_v5 = vrot.slane %v3661_v60, 2 }
  0x43   : > { %2714 = vmatmul.mubr.msk.bf16.vlgmr.msra.gmra.mrb[0].mxu0 %vm533_vm2, %v1072_v58  ;;  %v1076_v61 = vsel %vm1061_vm3, %v1071_v48, %v1075_v53  ;;  %v1079_v3 = vor.u32 %v1078_v54, %v1077_v59  ;;  %v504_v4 = vsel %vm460_vm1, %v499_v55, %v503_v56  ;;  %v3681_v7 = vshll.u32 %v3649_v52, 16 }
  0x44   : > { %2730 = vmatpush3.bf16.msra.mxu0 %v1292_v35  ;;  %2717 = vmatprep.mubr.msk.bf16.mxu0 %vm533_vm2, %v1076_v61  ;;  %v1081_v10 = vrot.slane %v3667_v63, 1  ;;  %v3688_v11 = vshrl.u32 %v3649_v52, 16  ;;  %v3691_v12 = vshll.u32 %v3656_v57, 16  ;;  %v1089_v13 = vshrl.u32 %v3656_v57, 16 }
  0x45   : > { %3053 = vmatprep.subr.msk.bf16.mxu0 %vm558_vm0, %v3675_v1  ;;  %v511_v16 = vrot.slane %v3661_v60, 1  ;;  %v1080_v17 = vsel %vm1061_vm3, %v1075_v53, %v1079_v3  ;;  %v507_v19 = vor.u32 %v3646_v51, %v503_v56  ;;  %v1086_v20 = vrot.slane %v3681_v7, 2 }
  0x46   : > { %2646 = vmatmul.mubr.msk.bf16.gmra.mrb[4].mxu1 %vm533_vm2, %v496_v62  ;;  %v1083_v18 = vor.u32 %v1082_v5, %v1081_v10  ;;  %v1085_v21 = vrot.slane %v3688_v11, 1  ;;  %v519_v23 = vrot.slane %v3681_v7, 1  ;;  %v1091_v25 = vrot.slane %v1089_v13, 1  ;;  %v3754_v10 = vld [vmem:[%s4226_s3 + $0x4] ss:$0 sps:$4 sm:$0xcc]  }
  0x47   : > { %2649 = vmatprep.mubr.msk.bf16.mxu1 %vm533_vm2, %v504_v4  ;;  %v515_v22 = vor.u32 %v3667_v63, %v511_v16  ;;  %v1092_v27 = vrot.slane %v3691_v12, 2  ;;  %v1096_v28 = vshrl.u32 %v3684_v8, 16  ;;  %v1099_v30 = vshll.u32 %v3684_v8, 16 }
  0x48   : > { %v1084_v26 = vsel %vm1061_vm3, %v1079_v3, %v1083_v18  ;;  %v676_v34 = vsel %vm558_vm0, %v458_v0, 0  ;;  %v512_v35 = vsel %vm460_vm1, %v507_v19, %v511_v16  ;;  %v1087_v39 = vor.u32 %v1086_v20, %v1085_v21 }
  0x49   : > { %2658 = vmatpush3.bf16.msra.mxu1 %v676_v34  ;;  %v520_v40 = vsel %vm460_vm1, %v515_v22, %v519_v23  ;;  %v527_v41 = vrot.slane %v3691_v12, 1  ;;  %v1093_v42 = vor.u32 %v1092_v27, %v1091_v25  ;;  %v523_v44 = vor.u32 %v3688_v11, %v519_v23 }
  0x4a   : > { %3049 = vmatprep.subr.msk.bf16.mxu1 %vm558_vm0, %v775_v33  ;;  %v1098_v45 = vrot.slane %v1096_v28, 1  ;;  %v1101_v46 = vrot.slane %v1099_v30, 2  ;;  %v1088_v48 = vsel %vm1061_vm3, %v1083_v18, %v1087_v39  ;;  %v1246_v54 = vrot.slane %v3578_v6, 2 }
  0x4b   : > { %2718 = vmatmul.mubr.msk.bf16.gmra.mrb[4].mxu0 %vm533_vm2, %v1080_v17  ;;  %v1094_v49 = vsel %vm1061_vm3, %v1087_v39, %v1093_v42  ;;  %v528_v50 = vsel %vm460_vm1, %v523_v44, %v527_v41  ;;  %v1247_v55 = vrot.slane %v3583_v9, 2  ;;  %v780_v56 = vrot.slane %v3583_v9, 1 }
  0x4c   : > { %2721 = vmatprep.mubr.msk.bf16.mxu0 %vm533_vm2, %v1084_v26  ;;  %v1102_v53 = vor.u32 %v1101_v46, %v1098_v45  ;;  %v782_v58 = vrot.slane %v3602_v24, 1  ;;  %v784_v59 = vrot.slane %v3606_v29, 1  ;;  %vm1245_vm4 = vcmask 1045504  }
  0x4d   : > { %vm776_vm5 = vcmask 1046528   ;;  %v786_v61 = vrot.slane %v3626_v38, 1  ;;  %v788_v62 = vrot.slane %v3634_v43, 1  ;;  %v1249_v0 = vrot.slane %v3602_v24, 2 }
  0x4e   : > { %2650 = vmatmul.mubr.msk.bf16.gmra.mrb[8].mxu1 %vm533_vm2, %v512_v35  ;;  %v3745_v3 = vsel %vm776_vm5, %v780_v56, %v782_v58  ;;  %v3748_v4 = vsel %vm776_vm5, %v782_v58, %v784_v59  ;;  %v790_v5 = vrot.slane %v3649_v52, 1  ;;  %v1251_v16 = vrot.slane %v3606_v29, 2 }
  0x4f   : > { %2653 = vmatprep.mubr.msk.bf16.mxu1 %vm533_vm2, %v520_v40  ;;  %v3758_v17 = vsel %vm776_vm5, %v784_v59, %v786_v61  ;;  %v3761_v18 = vsel %vm776_vm5, %v786_v61, %v788_v62  ;;  %v792_v19 = vrot.slane %v3656_v57, 1  ;;  %v1103_v20 = vsel %vm1061_vm3, %v1093_v42, %v1102_v53 }
  0x50   : > { %v1248_v21 = vsel %vm1245_vm4, %v1246_v54, %v1247_v55  ;;  %v3768_v22 = vsel %vm776_vm5, %v788_v62, %v790_v5  ;;  %v1531_v23 = vrot.slane %v3593_v15, 2  ;;  %v819_v25 = vsel %vm558_vm0, %v775_v33, 0 }
  0x51   : > { %v3775_v26 = vsel %vm776_vm5, %v790_v5, %v792_v19  ;;  %v1532_v27 = vrot.slane %v3590_v14, 3  ;;  %v1534_v34 = vrot.slane %v3613_v32, 2  ;;  %v940_v35 = vrot.slane %v3754_v10, 2 }
  0x52   : > { %v1535_v39 = vrot.slane %v3610_v31, 3  ;;  %v1538_v40 = vrot.slane %v3623_v37, 2  ;;  %v1539_v15 = vrot.slane %v3620_v36, 3  ;;  %vm1530_vm6 = vsmask.f32 5376 }
  0x53   : > { %2722 = vmatmul.mubr.msk.bf16.gmra.mrb[8].mxu0 %vm533_vm2, %v1088_v48  ;;  %v1533_v41 = vor.u32 %v1532_v27, %v1531_v23  ;;  %v1542_v42 = vrot.slane %v3646_v51, 2  ;;  %v1543_v33 = vrot.slane %v3641_v47, 3  ;;  %v1546_v14 = vrot.slane %v3667_v63, 2 }
  0x54   : > { %2725 = vmatprep.mubr.msk.bf16.mxu0 %vm533_vm2, %v1094_v49  ;;  %v1536_v44 = vor.u32 %v1535_v39, %v1534_v34  ;;  %v1540_v45 = vor.u32 %v1539_v15, %v1538_v40  ;;  %v1547_v32 = vrot.slane %v3661_v60, 3  ;;  %v1550_v31 = vrot.slane %v3688_v11, 2  ;;  %v3803_v11 = vld [vmem:[%s4226_s3 + $0xc] ss:$0 sps:$4 sm:$0xcc]  }
  0x55   : > { %v1544_v46 = vor.u32 %v1543_v33, %v1542_v42  ;;  %v1551_v37 = vrot.slane %v3681_v7, 3  ;;  %v1554_v36 = vrot.slane %v1089_v13, 2  ;;  %v1555_v60 = vrot.slane %v3691_v12, 3 }
  0x56   : > { %2654 = vmatmul.mubr.msk.bf16.gmra.mrb[12].mxu1 %vm533_vm2, %v528_v50  ;;  %v3794_v47 = vsel %vm1530_vm6, %v1533_v41, %v1536_v44  ;;  %v3797_v51 = vsel %vm1530_vm6, %v1536_v44, %v1540_v45  ;;  %v1548_v63 = vor.u32 %v1547_v32, %v1546_v14  ;;  %v1558_v48 = vrot.slane %v1096_v28, 2 }
  0x57   : > { %2659 = vmatprep.mubr.msk.bf16.mxu1 %vm533_vm2, %v3570_v2  ;;  %v3806_v7 = vsel %vm1530_vm6, %v1540_v45, %v1544_v46  ;;  %v1552_v13 = vor.u32 %v1551_v37, %v1550_v31  ;;  %v1559_v49 = vrot.slane %v1099_v30, 3  ;;  %v3815_v12 = vsel %vm1245_vm4, %v1247_v55, %v1249_v0 }
  0x58   : > { %v3818_v50 = vsel %vm1530_vm6, %v1544_v46, %v1548_v63  ;;  %v1556_v53 = vor.u32 %v1555_v60, %v1554_v36  ;;  %v935_v54 = vrot.slane %v3684_v8, 1  ;;  %v1414_v58 = vsel %vm558_vm0, %v3675_v1, 0 }
  0x59   : > { %v3828_v28 = vsel %vm1245_vm4, %v1249_v0, %v1251_v16  ;;  %v3831_v30 = vsel %vm1530_vm6, %v1548_v63, %v1552_v13  ;;  %v3833_v55 = vor.u32 %v1559_v49, %v1558_v48  ;;  %vm1716_vm7 = vcmask 1044480  }
  0x5a   : > { %v3839_v1 = vsel %vm1530_vm6, %v1552_v13, %v1556_v53  ;;  %v3842_v59 = vsel %vm776_vm5, %v792_v19, %v935_v54  ;;  %v1717_v61 = vrot.slane %v3583_v9, 3  ;;  %v1574_v62 = vrot.slane %v3803_v11, 2 }
  0x5b   : > { %2726 = vmatmul.mubr.msk.bf16.gmra.mrb[12].mxu0 %vm533_vm2, %v1103_v20  ;;  %v3848_v0 = vsel %vm1530_vm6, %v1556_v53, %v3833_v55  ;;  %v1718_v5 = vrot.slane %v3602_v24, 3  ;;  %v1720_v20 = vrot.slane %v3606_v29, 3  ;;  %v1722_v23 = vrot.slane %v3626_v38, 3 }
  0x5c   : > { %2731 = vmatprep.mubr.msk.bf16.mxu0 %vm533_vm2, %v1248_v21  ;;  %v3853_v21 = vld [vmem:[%s3548_s30 + $0x10] sm:$0xff]   ;;  %v1724_v19 = vrot.slane %v3634_v43, 3  ;;  %v1728_v27 = vrot.slane %v3656_v57, 3  ;;  %v1253_v34 = vrot.slane %v3626_v38, 2  ;;  %v1730_v15 = vrot.slane %v3684_v8, 3 }
  0x5d   : > { %v3863_v39 = vsel %vm1716_vm7, %v1717_v61, %v1718_v5  ;;  %v3866_v40 = vsel %vm1716_vm7, %v1718_v5, %v1720_v20  ;;  %v3872_v41 = vsel %vm1716_vm7, %v1720_v20, %v1722_v23  ;;  %v1732_v44 = vrot.slane %v3853_v21, 3 }
  0x5e   : > { %2660 = vmatmul.mubr.msk.bf16.vlgmr.msra.gmra.mrb[0].mxu1 %vm533_vm2, %v3578_v6  ;;  %v3875_v42 = vsel %vm1716_vm7, %v1722_v23, %v1724_v19  ;;  %v1255_v45 = vrot.slane %v3634_v43, 2  ;;  %v3887_v32 = vsel %vm1716_vm7, %v1728_v27, %v1730_v15  ;;  %v1254_v31 = vsel %vm1245_vm4, %v1251_v16, %v1253_v34 }
  0x5f   : > { %2663 = vmatprep.mubr.msk.bf16.mxu1 %vm533_vm2, %v3583_v9  ;;  %2676 = vmatpush3.bf16.msra.mxu1 %v819_v25  ;;  %v1726_v25 = vrot.slane %v3649_v52, 3  ;;  %v3892_v46 = vsel %vm1716_vm7, %v1730_v15, %v1732_v44  ;;  %v1257_v36 = vrot.slane %v3649_v52, 2  ;;  %v777_v16 = vrot.slane %v3570_v2, 1  ;;  %v1715_v9 = vld [vmem:[%s4226_s3 + $0x10] sm:$0x3] }
  0x60   : > { %3050 = vmatprep.subr.msk.bf16.mxu1 %vm558_vm0, %v940_v35  ;;  %v1256_v37 = vsel %vm1245_vm4, %v1253_v34, %v1255_v45  ;;  %v778_v63 = vrot.slane %v3578_v6, 1  ;;  %v945_v6 = vsel %vm558_vm0, %v940_v35, 0  ;;  %vm3364_vm8 = vmmov 0  }
  0x61   : > { %v3878_v33 = vsel %vm1716_vm7, %v1724_v19, %v1726_v25  ;;  %v3884_v14 = vsel %vm1716_vm7, %v1726_v25, %v1728_v27 }
  0x62   : > { %v779_v11 = vsel %vm776_vm5, %v777_v16, %v778_v63  ;;  %v781_v2 = vsel %vm776_vm5, %v778_v63, %v780_v56  ;;  %v1759_v56 = vsel %vm558_vm0, %v1715_v9, 0 }
  0x63   : > { %2732 = vmatmul.mubr.msk.bf16.vlgmr.msra.gmra.mrb[0].mxu0 %vm533_vm2, %v3815_v12 }
  0x64   : > { %2748 = vmatpush3.bf16.msra.mxu0 %v1414_v58  ;;  %2735 = vmatprep.mubr.msk.bf16.mxu0 %vm533_vm2, %v3828_v28 }
  0x65   : > { %3054 = vmatprep.subr.msk.bf16.mxu0 %vm558_vm0, %v1574_v62 }
  0x66   : > { %2664 = vmatmul.mubr.msk.bf16.gmra.mrb[4].mxu1 %vm533_vm2, %v3602_v24  ;;  %v1259_v24 = vrot.slane %v3656_v57, 2  ;;  %v1261_v57 = vrot.slane %v3684_v8, 2 }
  0x67   : > { %2667 = vmatprep.mubr.msk.bf16.mxu1 %vm533_vm2, %v3606_v29  ;;  %v1258_v29 = vsel %vm1245_vm4, %v1255_v45, %v1257_v36 }
  0x68   : > { %v1260_v60 = vsel %vm1245_vm4, %v1257_v36, %v1259_v24 }
  0x6b   : > { %2736 = vmatmul.mubr.msk.bf16.gmra.mrb[4].mxu0 %vm533_vm2, %v1254_v31 }
  0x6c   : > { %2739 = vmatprep.mubr.msk.bf16.mxu0 %vm533_vm2, %v1256_v37 }
  0x6e   : > { %2668 = vmatmul.mubr.msk.bf16.gmra.mrb[8].mxu1 %vm533_vm2, %v3626_v38  ;;  %v1262_v38 = vsel %vm1245_vm4, %v1259_v24, %v1261_v57 }
  0x6f   : > { %2671 = vmatprep.mubr.msk.bf16.mxu1 %vm533_vm2, %v3634_v43  ;;  %v1600_v43 = vsel %vm558_vm0, %v1574_v62, 0 }
  0x73   : > { %2740 = vmatmul.mubr.msk.bf16.gmra.mrb[8].mxu0 %vm533_vm2, %v1258_v29 }
  0x74   : > { %2743 = vmatprep.mubr.msk.bf16.mxu0 %vm533_vm2, %v1260_v60 }
  0x76   : > { %2672 = vmatmul.mubr.msk.bf16.gmra.mrb[12].mxu1 %vm533_vm2, %v3649_v52  ;;  %v1408_v52 = vrot.slane %v3853_v21, 2 }
  0x77   : > { %2677 = vmatprep.mubr.msk.bf16.mxu1 %vm533_vm2, %v779_v11 }
  0x78   : > { %v1409_v8 = vsel %vm1245_vm4, %v1261_v57, %v1408_v52 }
  0x7b   : > { %2744 = vmatmul.mubr.msk.bf16.gmra.mrb[12].mxu0 %vm533_vm2, %v1262_v38 }
  0x7c   : > { %2749 = vmatprep.mubr.msk.bf16.mxu0 %vm533_vm2, %v3815_v12 }
  0x7e   : > { %2678 = vmatmul.mubr.msk.bf16.vlgmr.msra.gmra.mrb[0].mxu1 %vm533_vm2, %v781_v2 }
  0x7f   : > { %2681 = vmatprep.mubr.msk.bf16.mxu1 %vm533_vm2, %v3745_v3  ;;  %2694 = vmatpush3.bf16.msra.mxu1 %v945_v6 }
  0x83   : > { %2750 = vmatmul.mubr.msk.bf16.vlgmr.msra.gmra.mrb[0].mxu0 %vm533_vm2, %v3828_v28 }
  0x84   : > { %2766 = vmatpush3.bf16.msra.mxu0 %v1600_v43  ;;  %2753 = vmatprep.mubr.msk.bf16.mxu0 %vm533_vm2, %v1254_v31 }
  0x85   : > { %3055 = vmatprep.subr.msk.bf16.mxu0 %vm558_vm0, %v1715_v9 }
  0x86   : > { %2682 = vmatmul.mubr.msk.bf16.gmra.mrb[4].mxu1 %vm533_vm2, %v3748_v4 }
  0x87   : > { %2685 = vmatprep.mubr.msk.bf16.mxu1 %vm533_vm2, %v3758_v17 }
  0x8b   : > { %2754 = vmatmul.mubr.msk.bf16.gmra.mrb[4].mxu0 %vm533_vm2, %v1256_v37 }
  0x8c   : > { %2757 = vmatprep.mubr.msk.bf16.mxu0 %vm533_vm2, %v1258_v29 }
  0x8e   : > { %2686 = vmatmul.mubr.msk.bf16.gmra.mrb[8].mxu1 %vm533_vm2, %v3761_v18 }
  0x8f   : > { %2689 = vmatprep.mubr.msk.bf16.mxu1 %vm533_vm2, %v3768_v22 }
  0x93   : > { %2758 = vmatmul.mubr.msk.bf16.gmra.mrb[8].mxu0 %vm533_vm2, %v1260_v60 }
  0x94   : > { %2761 = vmatprep.mubr.msk.bf16.mxu0 %vm533_vm2, %v1262_v38 }
  0x96   : > { %2690 = vmatmul.mubr.msk.bf16.gmra.mrb[12].mxu1 %vm533_vm2, %v3775_v26 }
  0x97   : > { %2695 = vmatprep.mubr.msk.bf16.mxu1 %vm533_vm2, %v781_v2 }
  0x9b   : > { %2762 = vmatmul.mubr.msk.bf16.gmra.mrb[12].mxu0 %vm533_vm2, %v1409_v8 }
  0x9c   : > { %2767 = vmatprep.mubr.msk.bf16.mxu0 %vm533_vm2, %v3794_v47 }
  0x9e   : > { %2696 = vmatmul.mubr.msk.bf16.vlgmr.msra.gmra.mrb[0].mxu1 %vm533_vm2, %v3745_v3  ;;  %v1563_v3 = vshrl.u32 %v3853_v21, 16 }
  0x9f   : > { %2699 = vmatprep.mubr.msk.bf16.mxu1 %vm533_vm2, %v3748_v4  ;;  %v1566_v4 = vshll.u32 %v3853_v21, 16 }
  0xa0   : > { %v1565_v10 = vrot.slane %v1563_v3, 2 }
  0xa3   : > { %2768 = vmatmul.mubr.msk.bf16.vlgmr.msra.gmra.mrb[0].mxu0 %vm533_vm2, %v3797_v51 }
  0xa4   : > { %2784 = vmatpush3.bf16.msra.mxu0 %v1759_v56  ;;  %2771 = vmatprep.mubr.msk.bf16.mxu0 %vm533_vm2, %v3806_v7 }
  0xa6   : > { %2700 = vmatmul.mubr.msk.bf16.gmra.mrb[4].mxu1 %vm533_vm2, %v3758_v17  ;;  %v1568_v17 = vrot.slane %v1566_v4, 3 }
  0xa7   : > { %2703 = vmatprep.mubr.msk.bf16.mxu1 %vm533_vm2, %v3761_v18 }
  0xa8   : > { %v1569_v18 = vor.u32 %v1568_v17, %v1565_v10 }
  0xaa   : > { %v1570_v35 = vsel %vm1530_vm6, %v3833_v55, %v1569_v18 }
  0xab   : > { %2772 = vmatmul.mubr.msk.bf16.gmra.mrb[4].mxu0 %vm533_vm2, %v3818_v50 }
  0xac   : > { %2775 = vmatprep.mubr.msk.bf16.mxu0 %vm533_vm2, %v3831_v30 }
  0xae   : > { %2704 = vmatmul.mubr.msk.bf16.gmra.mrb[8].mxu1 %vm533_vm2, %v3768_v22  ;;  %v3363_v22 = vmov 0.0|0.0  }
  0xaf   : > { %2707 = vmatprep.mubr.msk.bf16.mxu1 %vm533_vm2, %v3775_v26  ;;  %2871 = vmatprep.subr.bf16.mxu1 %v3363_v22  ;;  %v3365_v26 = vmov 0.0  }
  0xb3   : > { %2776 = vmatmul.mubr.msk.bf16.gmra.mrb[8].mxu0 %vm533_vm2, %v3839_v1 }
  0xb4   : > { %2779 = vmatprep.mubr.msk.bf16.mxu0 %vm533_vm2, %v3848_v0 }
  0xb6   : > { %2708 = vmatmul.mubr.msk.bf16.gmra.mrb[12].mxu1 %vm533_vm2, %v3842_v59 }
  0xb7   : > { %2833 = vmatprep.mubr.msk.f32.mxu1 %vm3364_vm8, %v3365_v26 }
  0xbb   : > { %2780 = vmatmul.mubr.msk.bf16.gmra.mrb[12].mxu0 %vm533_vm2, %v1570_v35 }
  0xbc   : > { %2785 = vmatprep.mubr.msk.bf16.mxu0 %vm533_vm2, %v3863_v39 }
  0xc3   : > { %2786 = vmatmul.mubr.msk.bf16.vlgmr.msra.gmra.mrb[0].mxu0 %vm533_vm2, %v3866_v40 }
  0xc4   : > { %2789 = vmatprep.mubr.msk.bf16.mxu0 %vm533_vm2, %v3872_v41 }
  0xcb   : > { %2790 = vmatmul.mubr.msk.bf16.gmra.mrb[4].mxu0 %vm533_vm2, %v3875_v42 }
  0xcc   : > { %2793 = vmatprep.mubr.msk.bf16.mxu0 %vm533_vm2, %v3878_v33 }
  0xd3   : > { %2794 = vmatmul.mubr.msk.bf16.gmra.mrb[8].mxu0 %vm533_vm2, %v3884_v14 }
  0xd4   : > { %2797 = vmatprep.mubr.msk.bf16.mxu0 %vm533_vm2, %v3887_v32 }
  0xdb   : > { %2798 = vmatmul.mubr.msk.bf16.gmra.mrb[12].mxu0 %vm533_vm2, %v3892_v46 }
 0x171   : > { %v2697_v47 = vpop.f32.mrb[0].mxu1 }
 0x172   : > { %v981_v51 = vpop.f32.mrb[1].mxu1 }
 0x173   : > { %v2698_v7 = vpop.f32.mrb[2].mxu1 }
 0x174   : > { %v984_v13 = vpop.f32.mrb[3].mxu1 }
 0x179   : > { %v2701_v48 = vpop.f32.mrb[4].mxu1 }
 0x17a   : > { %v997_v49 = vpop.f32.mrb[5].mxu1 }
 0x17b   : > { %v2702_v12 = vpop.f32.mrb[6].mxu1 }
 0x17c   : > { %v1000_v50 = vpop.f32.mrb[7].mxu1 }
 0x181   : > { %v2705_v53 = vpop.f32.mrb[8].mxu1 }
 0x182   : > { %v1013_v54 = vpop.f32.mrb[9].mxu1 }
 0x183   : > { %v2706_v58 = vpop.f32.mrb[10].mxu1 }
 0x184   : > { %v1016_v28 = vpop.f32.mrb[11].mxu1 }
 0x189   : > { %v4011_v30 = vpop.f32.mrb[12].mxu1 }
 0x18a   : > { %v4013_v55 = vpop.f32.mrb[13].mxu1 }
 0x18b   : > { %v4015_v1 = vpop.f32.mrb[14].mxu1 }
 0x18c   : > { %v4017_v59 = vpop.f32.mrb[15].mxu1 }
 0x196   : > { %v2787_v61 = vpop.f32.mrb[0].mxu0 }
 0x197   : > { %v2919_v62 = vadd.f32 %v2787_v61, %v2697_v47  ;;  %v1795_v0 = vpop.f32.mrb[1].mxu0 }
 0x198   : > { %v2920_v5 = vadd.f32 %v1795_v0, %v981_v51  ;;  %v2788_v20 = vpop.f32.mrb[2].mxu0 }
 0x199   : > { %v2921_v21 = vadd.f32 %v2788_v20, %v2698_v7  ;;  %v1798_v23 = vpop.f32.mrb[3].mxu0  ;;  %v4019_v25 = vmul.f32 %v2919_v62, %v2919_v62 }
 0x19a   : > { %v2922_v19 = vadd.f32 %v1798_v23, %v984_v13  ;;  %v4023_v39 = vmul.f32 %v2920_v5, %v2920_v5 }
 0x19b   : > { %v2485_v27 = vpack.c.bf16 %v2921_v21, %v2919_v62  ;;  %v4021_v34 = vmul.f32 %v2921_v21, %v2921_v21 }
 0x19c   : > { %v2480_v40 = vpack.c.bf16 %v2922_v19, %v2920_v5  ;;  %v4025_v15 = vmul.f32 %v2922_v19, %v2922_v19 }
 0x19d   : > { %2517 = vst [vmem:[%s3557_s22 + $0x8] sm:$0xff] %v2485_v27   ;;  %v2899_v41 = vpack.c.bf16 %v4021_v34, %v4019_v25 }
 0x19e   : > { %2481 = vst [vmem:[%s3557_s22] sm:$0xff] %v2480_v40   ;;  %v2896_v42 = vpack.c.bf16 %v4025_v15, %v4023_v39  ;;  %v2791_v33 = vpop.f32.mrb[4].mxu0  ;;  %2873 = vmatpush3.bf16.msra.mxu1 %v2480_v40 }
 0x19f   : > { %v2923_v44 = vadd.f32 %v2791_v33, %v2701_v48  ;;  %v1811_v45 = vpop.f32.mrb[5].mxu0  ;;  %2874 = vmatprep.subr.bf16.mxu1 %v3363_v22 }
 0x1a0   : > { %v2924_v14 = vadd.f32 %v1811_v45, %v997_v49  ;;  %v2792_v32 = vpop.f32.mrb[6].mxu0 }
 0x1a1   : > { %v2925_v46 = vadd.f32 %v2792_v32, %v2702_v12  ;;  %v1814_v31 = vpop.f32.mrb[7].mxu0  ;;  %v4034_v36 = vmul.f32 %v2923_v44, %v2923_v44 }
 0x1a2   : > { %v2926_v37 = vadd.f32 %v1814_v31, %v1000_v50  ;;  %2876 = vmatpush3.bf16.msra.mxu1 %v2485_v27  ;;  %v2039_v16 = vmul.f32 %v2924_v14, %v2924_v14 }
 0x1a3   : > { %v2495_v24 = vpack.c.bf16 %v2925_v46, %v2923_v44  ;;  %v4036_v29 = vmul.f32 %v2925_v46, %v2925_v46  ;;  %2877 = vmatprep.subr.bf16.mxu1 %v3363_v22 }
 0x1a4   : > { %v2490_v63 = vpack.c.bf16 %v2926_v37, %v2924_v14  ;;  %v2040_v60 = vmul.f32 %v2926_v37, %v2926_v37 }
 0x1a5   : > { %2519 = vst [vmem:[%s3557_s22 + $0x18] sm:$0xff] %v2495_v24   ;;  %v2905_v57 = vpack.c.bf16 %v4036_v29, %v4034_v36 }
 0x1a6   : > { %2518 = vst [vmem:[%s3557_s22 + $0x10] sm:$0xff] %v2490_v63   ;;  %v2902_v11 = vpack.c.bf16 %v2040_v60, %v2039_v16  ;;  %v2795_v38 = vpop.f32.mrb[8].mxu0  ;;  %2879 = vmatpush3.bf16.msra.mxu1 %v2490_v63 }
 0x1a7   : > { %v2927_v2 = vadd.f32 %v2795_v38, %v2705_v53  ;;  %v1827_v6 = vpop.f32.mrb[9].mxu0  ;;  %2880 = vmatprep.subr.bf16.mxu1 %v3363_v22 }
 0x1a8   : > { %v2928_v43 = vadd.f32 %v1827_v6, %v1013_v54  ;;  %v2796_v9 = vpop.f32.mrb[10].mxu0 }
 0x1a9   : > { %v2929_v52 = vadd.f32 %v2796_v9, %v2706_v58  ;;  %v1830_v8 = vpop.f32.mrb[11].mxu0  ;;  %v2045_v3 = vmul.f32 %v2927_v2, %v2927_v2 }
 0x1aa   : > { %v2930_v56 = vadd.f32 %v1830_v8, %v1016_v28  ;;  %2882 = vmatpush3.bf16.msra.mxu1 %v2495_v24  ;;  %v2043_v17 = vmul.f32 %v2928_v43, %v2928_v43 }
 0x1ab   : > { %v2505_v4 = vpack.c.bf16 %v2929_v52, %v2927_v2  ;;  %v2046_v10 = vmul.f32 %v2929_v52, %v2929_v52  ;;  %2883 = vmatprep.subr.bf16.mxu1 %v3363_v22 }
 0x1ac   : > { %v2500_v18 = vpack.c.bf16 %v2930_v56, %v2928_v43  ;;  %v2044_v35 = vmul.f32 %v2930_v56, %v2930_v56 }
 0x1ad   : > { %2521 = vst [vmem:[%s3557_s22 + $0x28] sm:$0xff] %v2505_v4   ;;  %v2911_v47 = vpack.c.bf16 %v2046_v10, %v2045_v3 }
 0x1ae   : > { %2520 = vst [vmem:[%s3557_s22 + $0x20] sm:$0xff] %v2500_v18   ;;  %v2908_v51 = vpack.c.bf16 %v2044_v35, %v2043_v17  ;;  %v2799_v7 = vpop.f32.mrb[12].mxu0  ;;  %2885 = vmatpush3.bf16.msra.mxu1 %v2500_v18 }
 0x1af   : > { %v2931_v13 = vadd.f32 %v2799_v7, %v4011_v30  ;;  %v1843_v48 = vpop.f32.mrb[13].mxu0  ;;  %2886 = vmatprep.subr.bf16.mxu1 %v3363_v22 }
 0x1b0   : > { %v2932_v49 = vadd.f32 %v1843_v48, %v4013_v55  ;;  %v2800_v12 = vpop.f32.mrb[14].mxu0 }
 0x1b1   : > { %v2933_v50 = vadd.f32 %v2800_v12, %v4015_v1  ;;  %v1846_v53 = vpop.f32.mrb[15].mxu0  ;;  %v2049_v58 = vmul.f32 %v2931_v13, %v2931_v13  ;;  %v2448_v1 = vld [vmem:[%s368_s23] ss:$0 sm:$0xff]  ;;  %s2149_s23 = sshll.u32 %s3557_s22, 4  ;;  %s4084_s23 = int_to_ptr.vmem [resolvable:$true] %s2149_s23 }
 0x1b2   : > { %v2934_v54 = vadd.f32 %v1846_v53, %v4017_v59  ;;  %2888 = vmatpush3.bf16.msra.mxu1 %v2505_v4  ;;  %v2047_v30 = vmul.f32 %v2932_v49, %v2932_v49  ;;  %s3182_s21 = scalar_lea.vmem %s4084_s23, 1024 }
 0x1b3   : > { %v2515_v28 = vpack.c.bf16 %v2933_v50, %v2931_v13  ;;  %v2050_v61 = vmul.f32 %v2933_v50, %v2933_v50  ;;  %2889 = vmatprep.subr.bf16.mxu1 %v3363_v22  ;;  %p3183_p9 = scmp.ne.s32.totalorder %s4084_s23, %s3182_s21 }
 0x1b4   : > { %v2510_v62 = vpack.c.bf16 %v2934_v54, %v2932_v49  ;;  %v2048_v0 = vmul.f32 %v2934_v54, %v2934_v54 }
 0x1b5   : > { %2523 = vst [vmem:[%s3557_s22 + $0x38] sm:$0xff] %v2515_v28   ;;  %v2917_v5 = vpack.c.bf16 %v2050_v61, %v2049_v58  ;;  %p3184_p10 = pnand %p3183_p9, %p3483_p5 }
 0x1b6   : > { %2522 = vst [vmem:[%s3557_s22 + $0x30] sm:$0xff] %v2510_v62   ;;  %v2914_v55 = vpack.c.bf16 %v2048_v0, %v2047_v30  ;;  %2891 = vmatpush3.bf16.msra.mxu1 %v2510_v62  ;;  %s3186_s22 = sshll.u32 %s3366_s17, 4  ;;  %s3187_s22 = int_to_ptr.vmem [resolvable:$false] %s3186_s22 }
 0x1b7   : > { %2892 = vmatprep.subr.bf16.mxu1 %v3363_v22  ;;  %p3185_p12 = pneg %p3184_p10  ;;  %s3188_s19 = scalar_lea.vmem %s3187_s22, 2048 }
 0x1b8   : > { %p3189_p0 = scmp.lt.s32.totalorder %s4084_s23, %s3187_s22  ;;  %p3190_p1 = scmp.lt.s32.totalorder %s3188_s19, %s3182_s21 }
 0x1ba   : > { %2894 = vmatpush3.bf16.msra.mxu1 %v2515_v28  ;;  %p3191_p3 = por %p3190_p1, %p3189_p0 }
 0x1bb   : > { %2895 = vmatprep.subr.bf16.mxu1 %v3363_v22 }
 0x1bc   : > { %p3192_p2 = pnand %p3191_p3, %p3185_p12 }
 0x1bd   : > { %2834 = vmatmul.mubr.f32.vlgmr.msra.gmra.mrb[16].mxu1 %v2448_v1 }
 0x1be   : > { %2897 = vmatpush3.bf16.msra.mxu1 %v2896_v42  ;;  %2868 = vmatprep.mubr.msk.f32.mxu1 %vm3364_vm8, %v3365_v26 }
 0x1bf   : > { %2898 = vmatprep.subr.bf16.mxu1 %v3363_v22 }
 0x1c2   : > { %2900 = vmatpush3.bf16.msra.mxu1 %v2899_v41 }
 0x1c3   : > { %2901 = vmatprep.subr.bf16.mxu1 %v3363_v22 }
 0x1c6   : > { %2903 = vmatpush3.bf16.msra.mxu1 %v2902_v11 }
 0x1c7   : > { %2904 = vmatprep.subr.bf16.mxu1 %v3363_v22 }
 0x1ca   : > { %2906 = vmatpush3.bf16.msra.mxu1 %v2905_v57 }
 0x1cb   : > { %2907 = vmatprep.subr.bf16.mxu1 %v3363_v22 }
 0x1ce   : > { %2909 = vmatpush3.bf16.msra.mxu1 %v2908_v51 }
 0x1cf   : > { %2910 = vmatprep.subr.bf16.mxu1 %v3363_v22 }
 0x1d2   : > { %2912 = vmatpush3.bf16.msra.mxu1 %v2911_v47 }
 0x1d3   : > { %2913 = vmatprep.subr.bf16.mxu1 %v3363_v22 }
 0x1d6   : > { %2915 = vmatpush3.bf16.msra.mxu1 %v2914_v55 }
 0x1d7   : > { %2916 = vmatprep.subr.bf16.mxu1 %v3363_v22 }
 0x1da   : > { %2918 = vmatpush3.bf16.msra.mxu1 %v2917_v5 }
 0x1dd   : > { %2869 = vmatmul.mubr.f32.vlgmr.msra.gmra.mrb[18].mxu1 %v2448_v1 }
 0x1de   : > { %3195 = shalt.err (!%p3192_p2)
}
 0x1df   : > { %s3196_s26 = scalar_lea.hbm %s4082_s12, 1024  ;;  %s3200_s18 = scalar_lea.hbm %s4227_s4, 6144 }
 0x1e0   : > { %p3197_p4 = scmp.ne.s32.totalorder %s4082_s12, %s3196_s26  ;;  %p3201_p9 = scmp.lt.u32.totalorder %s4082_s12, %s4227_s4 }
 0x1e1   : > { %p3202_p10 = scmp.lt.u32.totalorder %s3200_s18, %s3196_s26  ;;  %p3204_p0 = scmp.lt.u32.totalorder %s3196_s26, %s4082_s12 }
 0x1e2   : > { %p3198_p6 = pnand %p3197_p4, %p3483_p5 }
 0x1e3   : > { %p3203_p12 = por %p3202_p10, %p3201_p9 }
 0x1e4   : > { %p3199_p8 = pneg %p3198_p6 }
 0x1e5   : > { %p3205_p1 = por %p3204_p0, %p3203_p12 }
 0x1e7   : > { %p3206_p3 = pnand %p3205_p1, %p3199_p8 }
 0x1e9   : > { %3209 = shalt.err (!%p3206_p3)
}
 0x1ea   : > { %s3367_s6 = smov 64   ;;  %s3368_s14 = smov 4   ;;  %v1961_v22 = vld [vmem:[%s3559_s13] sm:$0xff] }
 0x1eb   : > { %3056 = dma.vmem_to_hbm [thread:$0]  (%p3483_p5), %s4084_s23, 1024, %s4082_s12, %s4088_s15, %s3367_s6, %s3367_s6, %s3368_s14  }
 0x1ec   : > { %s4262_s20 = sadd.s32 4294967295, %s3360_s7   ;;  %s2454_s21 = sshll.u32 %s3348_s28, 7 }
 0x1ed   : > { %s4114_s8 = sand.u32 1, %s4262_s20   ;;  %s2165_s17 = sshll.u32 %s3559_s13, 4  ;;  %s4126_s17 = int_to_ptr.vmem [resolvable:$true] %s2165_s17 }
 0x1ee   : > { %s4124_s26 = scalar_lea.hbm %s4228_s5, %s2454_s21  ;;  %s2129_s16 = scalar_lea.sflag [#allocation5], %s4114_s8 }
 0x1ef   : > { %s3210_s23 = scalar_lea.vmem %s4126_s17, 128  ;;  %s3369_s12 = smov [#allocation4]  }
 0x1f0   : > { %p3211_p5 = scmp.ne.s32.totalorder %s4126_s17, %s3210_s23  ;;  %s3214_s15 = sshll.u32 %s3369_s12, 4  ;;  %s3215_s15 = int_to_ptr.vmem [resolvable:$false] %s3214_s15 }
 0x1f1   : > { %s3216_s27 = scalar_lea.vmem %s3215_s15, 256  ;;  %p3217_p6 = scmp.lt.s32.totalorder %s4126_s17, %s3215_s15 }
 0x1f2   : > { %p3212_p2 = pnand %p3211_p5, %p3512_p11  ;;  %p3218_p8 = scmp.lt.s32.totalorder %s3216_s27, %s3210_s23 }
 0x1f4   : > { %p3213_p4 = pneg %p3212_p2  ;;  %p3219_p9 = por %p3218_p8, %p3217_p6 }
 0x1f6   : > { %p3220_p10 = pnand %p3219_p9, %p3213_p4 }
 0x290   : > { %v2028_v26 = vpop.f32.mrb[16].mxu1 }
 0x291   : > { %v2032_v59 = vadd.f32 %v2028_v26, %v1961_v22  ;;  %v2835_v20 = vpop.f32.mrb[17].mxu1 }
 0x293   : > { %2033 = vst [vmem:[%s3559_s13] sm:$0xff] %v2032_v59 }
 0x294   : > { %3223 = shalt.err (!%p3220_p10)
}
 0x295   : > { %s3224_s13 = scalar_lea.hbm %s4124_s26, 128  ;;  %s3228_s9 = scalar_lea.hbm %s4228_s5, 256 }
 0x296   : > { %p3225_p12 = scmp.ne.s32.totalorder %s4124_s26, %s3224_s13  ;;  %p3229_p3 = scmp.lt.u32.totalorder %s4124_s26, %s4228_s5 }
 0x297   : > { %p3230_p5 = scmp.lt.u32.totalorder %s3228_s9, %s3224_s13  ;;  %p3232_p4 = scmp.lt.u32.totalorder %s3224_s13, %s4124_s26 }
 0x298   : > { %p3226_p0 = pnand %p3225_p12, %p3512_p11 }
 0x299   : > { %p3231_p2 = por %p3230_p5, %p3229_p3 }
 0x29a   : > { %p3227_p1 = pneg %p3226_p0 }
 0x29b   : > { %p3233_p6 = por %p3232_p4, %p3231_p2 }
 0x29d   : > { %p3234_p8 = pnand %p3233_p6, %p3227_p1 }
 0x29f   : > { %3237 = shalt.err (!%p3234_p8)
}
 0x2a0   : > { %3057 = dma.vmem_to_hbm [thread:$0]  (%p3512_p11), %s4126_s17, 128, %s4124_s26, %s2129_s16   ;;  %v2034_v21 = vld [vmem:[%s3561_s11] sm:$0xff] }
 0x2a1   : > { %s2178_s14 = sshll.u32 %s3561_s11, 4  ;;  %s4263_s19 = sld [smem:[#allocation20_spill]]  ;;  %s2179_s14 = int_to_ptr.vmem [resolvable:$true] %s2178_s14 }
 0x2a2   : > { %s3238_s12 = scalar_lea.vmem %s2179_s14, 128  ;;  %s3370_s15 = smov [#allocation6]  }
 0x2a3   : > { %p3239_p9 = scmp.ne.s32.totalorder %s2179_s14, %s3238_s12  ;;  %s3242_s17 = sshll.u32 %s3370_s15, 4  ;;  %s3243_s17 = int_to_ptr.vmem [resolvable:$false] %s3242_s17 }
 0x2a4   : > { %s3244_s26 = scalar_lea.vmem %s3243_s17, 256  ;;  %p3245_p0 = scmp.lt.s32.totalorder %s2179_s14, %s3243_s17 }
 0x2a5   : > { %p3240_p10 = pnand %p3239_p9, %p3512_p11  ;;  %p3246_p1 = scmp.lt.s32.totalorder %s3244_s26, %s3238_s12 }
 0x2a7   : > { %s4160_s23 = scalar_lea.hbm %s4263_s19, %s2454_s21  ;;  %p3241_p12 = pneg %p3240_p10 }
 0x2a8   : > { %p3247_p3 = por %p3246_p1, %p3245_p0 }
 0x2aa   : > { %p3248_p5 = pnand %p3247_p3, %p3241_p12 }
 0x2b0   : > { %v2117_v23 = vpop.f32.mrb[18].mxu1 }
 0x2b1   : > { %v2121_v19 = vadd.f32 %v2117_v23, %v2034_v21  ;;  %v2870_v25 = vpop.f32.mrb[19].mxu1 }
 0x2b3   : > { %2122 = vst [vmem:[%s3561_s11] sm:$0xff] %v2121_v19 }
 0x2b4   : > { %3251 = shalt.err (!%p3248_p5)
}
 0x2b5   : > { %s3252_s28 = scalar_lea.hbm %s4160_s23, 128  ;;  %s3256_s27 = scalar_lea.hbm %s4263_s19, 256 }
 0x2b6   : > { %p3253_p2 = scmp.ne.s32.totalorder %s4160_s23, %s3252_s28  ;;  %p3257_p8 = scmp.lt.u32.totalorder %s4160_s23, %s4263_s19 }
 0x2b7   : > { %p3258_p9 = scmp.lt.u32.totalorder %s3256_s27, %s3252_s28  ;;  %p3260_p12 = scmp.lt.u32.totalorder %s3252_s28, %s4160_s23 }
 0x2b8   : > { %p3254_p4 = pnand %p3253_p2, %p3512_p11 }
 0x2b9   : > { %p3259_p10 = por %p3258_p9, %p3257_p8 }
 0x2ba   : > { %p3255_p6 = pneg %p3254_p4 }
 0x2bb   : > { %p3261_p0 = por %p3260_p12, %p3259_p10 }
 0x2bd   : > { %p3262_p1 = pnand %p3261_p0, %p3255_p6 }
 0x2bf   : > { %3265 = shalt.err (!%p3262_p1)
}
 0x2c0   : > { %3058 = dma.vmem_to_hbm [thread:$0]  (%p3512_p11), %s2179_s14, 128, %s4160_s23, %s2129_s16  }
 0x2c1 PF: > { %s4264_s18 = sld [smem:[#allocation11_spill]]  ;;  %p3072_p3 = scmp.ge.s32.totalorder %s3360_s7, 2 }
 0x2c3   : > { %p3063_p5 = pnand %p3072_p3, %p3497_p7 }
 0x2c7   : > { %s2190_s10 = sand.u32 1, %s4264_s18  }
 0x2c8   : > { %s2191_s6 = scalar_lea.sflag [#allocation3], %s2190_s10 }
 0x2c9   : > { %3311 = dma.done.wait (!%p3063_p5), %s2191_s6, 1024  }
 0x2ca   : > { %3313 = vsyncadd (!%p3063_p5), %s2191_s6, 4294966272  ;;  %s4266_s20 = sadd.s32 4294967294, %s3360_s7   ;;  %p3066_p2 = pnand %p3072_p3, %p3518_p13 }
 0x2cb   : > { %s2199_s22 = sand.u32 1, %s4266_s20  }
 0x2cc   : > { %s2200_s29 = scalar_lea.sflag [#allocation5], %s2199_s22 }
 0x2cd   : > { %3315 = dma.done.wait (!%p3066_p2), %s2200_s29, 256  }
 0x2ce   : > { %3317 = vsyncadd (!%p3066_p2), %s2200_s29, 4294967040  ;;  %s23_s7 = sadd.s32 1, %s3360_s7   ;;  %s4267_s21 = sld [smem:[#allocation9_spill]] }
 0x2cf   : > { %p20_p11 = scmp.ge.s32.totalorder %s23_s7, 8   ;;  %s4268_s22 = sld [smem:[#allocation10_spill]] }
 0x2d0   : > { %s4269_s23 = sld [smem:[#allocation18_spill]]  ;;  %s4270_s8 = sld [smem:[#allocation12_spill]] }
 0x2d1   : > { %s4271_s26 = sld [smem:[#allocation19_spill]]  ;;  %s4272_s27 = sld [smem:[#allocation13_spill]] }
 0x2d2   : > { %s4273_s28 = sld [smem:[#allocation14_spill]]  ;;  %s4274_s29 = sld [smem:[#allocation15_spill]] }
 0x2d3   : > { %s4275_s30 = sld [smem:[#allocation16_spill]]  ;;  %s4276_s24 = smov %s3336_s25 }
 0x2d4   :  { %22 = sbr.rel (!%p20_p11) target bundleno = 11 (0xb), region = 113 }
 0x2d6   : > { %s4277_s25 = smov %s4270_s8 }
 0x2db   :  { %2214 = vsyncpa [#allocation3], 1 }
 0x2dc   :  { %2216 = vsyncpa [#allocation3 + $0x1], 1 }
 0x2dd   :  { %2217 = vsyncpa [#allocation5], 1 }
 0x2de   :  { %2219 = vsyncpa [#allocation5 + $0x1], 1 }

</bundles_post_ra>
